<compile_context>
chip_gen: v6e
topology: v6e:2x2x1
jax: 0.10.0
libtpu: 0.0.40
codegen_flags: <defaults>
</compile_context>

<pallas_src>
import math
import functools

import jax
import jax.numpy as jnp
from jax.experimental import pallas as pl
from jax.experimental.pallas import tpu as pltpu

_SQRT2 = math.sqrt(2.0)


# --------------------------------------------------------------------------
# helpers
# --------------------------------------------------------------------------
def _round_up(v, m):
    return ((v + m - 1) // m) * m


def _min_sublane(dtype):
    # Sub-32-bit dtypes pack along sublanes: 8 rows f32, 16 bf16, 32 int8/fp8.
    return max(8, 32 // jnp.dtype(dtype).itemsize)


def _pick_tile(dim, pref, align):
    """Largest multiple of `align` that divides `dim` and is <= max(pref, align).

    `dim` is already a multiple of `align` (layout-minimum padded)."""
    pref = max(pref, align)
    if dim <= pref:
        return dim
    best = align
    t = align
    while t <= pref:
        if dim % t == 0:
            best = t
        t += align
    return best


def _split_for_cores(dim, tile, align):
    """Largest tile (multiple of align, dividing dim) that yields >= 2 grid steps."""
    best = None
    t = align
    while t <= dim // 2:
        if dim % t == 0:
            best = t
        t += align
    return best if best is not None else tile


@functools.lru_cache(maxsize=1)
def _num_tensorcores():
    """2 on v7x (megacore-style dual TC per chip), else 1.  Safe fallback: 1."""
    try:
        kind = jax.devices()[0].device_kind.lower()
    except Exception:
        return 1
    return 2 if ("v7" in kind or "7x" in kind) else 1


# --------------------------------------------------------------------------
# kernels
# --------------------------------------------------------------------------
def _kernel_bias(x_ref, w_ref, b_ref, o_ref, acc_ref, *, scale_eff, activation):
    k = pl.program_id(2)
    # Native-dtype (bf16/f32) operands straight into the MXU; f32 accumulator.
    prod = jnp.dot(x_ref[...], w_ref[...], preferred_element_type=jnp.float32)

    @pl.when(k == 0)
    def _():
        acc_ref[...] = prod            # overwrite: no separate zero-init store

    @pl.when(k > 0)
    def _():
        acc_ref[...] += prod

    @pl.when(k == pl.num_programs(2) - 1)
    def _():
        # scale_eff already folds in sqrt(2) for the fused_lrelu path; the bias
        # was pre-multiplied by lr_mul (* sqrt(2)) in the wrapper.
        out = acc_ref[...] * scale_eff + b_ref[...].astype(jnp.float32)
        if activation == "fused_lrelu":
            out = jnp.maximum(out, 0.2 * out)
        o_ref[...] = out.astype(o_ref.dtype)


def _kernel_nobias(x_ref, w_ref, o_ref, acc_ref, *, scale_eff, activation):
    k = pl.program_id(2)
    prod = jnp.dot(x_ref[...], w_ref[...], preferred_element_type=jnp.float32)

    @pl.when(k == 0)
    def _():
        acc_ref[...] = prod

    @pl.when(k > 0)
    def _():
        acc_ref[...] += prod

    @pl.when(k == pl.num_programs(2) - 1)
    def _():
        out = acc_ref[...] * scale_eff
        if activation == "fused_lrelu":
            out = jnp.maximum(out, 0.2 * out)
        o_ref[...] = out.astype(o_ref.dtype)


# --------------------------------------------------------------------------
# wrappers
# --------------------------------------------------------------------------
def prepare_weight(weight, compute_dtype=jnp.bfloat16):
    """One-time weight prep (do this at parameter-creation time, NOT per call).

    PyTorch layout (out_dim, in_dim) -> lane-dense (K_pad, N_pad) in the
    compute dtype, padded to multiples of 128 on both axes.
    # TODO(synk): on v7x an fp8 weight path (dequant folded into scale_eff)
    # would halve the weight stream again; int8 on v5e/v6e.
    """
    out_dim, in_dim = weight.shape
    K = _round_up(in_dim, 128)
    N = _round_up(out_dim, 128)
    w = weight.T.astype(compute_dtype)
    if (K, N) != (in_dim, out_dim):
        w = jnp.pad(w, ((0, K - in_dim), (0, N - out_dim)))
    return w


@functools.partial(
    jax.jit,
    static_argnames=("out_dim", "scale", "lr_mul", "activation",
                     "compute_dtype", "out_dtype", "tm", "tn", "tk",
                     "num_cores"))
def _equal_linear_impl(x, w_kn, bias, *, out_dim, scale, lr_mul, activation,
                       compute_dtype, out_dtype, tm, tn, tk, num_cores):
    B, in_dim = x.shape
    K, N = w_kn.shape
    assert K % 128 == 0 and N % 128 == 0, "weight must come from prepare_weight()"
    assert K >= in_dim and N >= out_dim

    sub = _min_sublane(compute_dtype)
    M = _round_up(B, sub)                      # layout-minimum padding only

    x = x.astype(compute_dtype)
    if (M, K) != (B, in_dim):
        x = jnp.pad(x, ((0, M - B), (0, K - in_dim)))

    # Tiles exactly divide the (layout-minimum) padded dims -> zero waste.
    tm = _pick_tile(M, tm, sub)
    tn = _pick_tile(N, tn, 128)
    tk = _pick_tile(K, tk, 128)

    # v7x: make sure both TensorCores get at least one parallel output tile.
    if num_cores >= 2 and (M // tm) * (N // tn) < 2:
        new_tn = _split_for_cores(N, tn, 128)
        if N // new_tn >= 2:
            tn = new_tn
        else:
            new_tm = _split_for_cores(M, tm, sub)
            if M // new_tm >= 2:
                tm = new_tm

    grid = (M // tm, N // tn, K // tk)

    # Fold sqrt(2) (fused_lrelu gain) and lr_mul into constants / prepped bias.
    gain = _SQRT2 if activation == "fused_lrelu" else 1.0
    scale_eff = float(scale) * gain

    x_spec = pl.BlockSpec((tm, tk), lambda i, j, k: (i, k))
    w_spec = pl.BlockSpec((tk, tn), lambda i, j, k: (k, j))
    o_spec = pl.BlockSpec((tm, tn), lambda i, j, k: (i, j))
    scratch = [pltpu.VMEM((tm, tn), jnp.float32)]
    cparams = pltpu.CompilerParams(
        dimension_semantics=("parallel", "parallel", "arbitrary"))
    out_shape = jax.ShapeDtypeStruct((M, N), out_dtype)
    in_bytes = jnp.dtype(compute_dtype).itemsize
    cost = pl.CostEstimate(
        flops=2 * M * N * K,
        transcendentals=0,
        bytes_accessed=(M * K + K * N) * in_bytes
                       + M * N * jnp.dtype(out_dtype).itemsize)

    if bias is not None:
        b_eff = (bias.astype(jnp.float32) * (float(lr_mul) * gain)).reshape(1, out_dim)
        if N != out_dim:
            b_eff = jnp.pad(b_eff, ((0, 0), (0, N - out_dim)))
        kernel = functools.partial(_kernel_bias, scale_eff=scale_eff,
                                   activation=activation)
        out = pl.pallas_call(
            kernel, out_shape=out_shape, grid=grid,
            in_specs=[x_spec, w_spec,
                      pl.BlockSpec((1, tn), lambda i, j, k: (0, j))],
            out_specs=o_spec, scratch_shapes=scratch,
            compiler_params=cparams, cost_estimate=cost,
        )(x, w_kn, b_eff)
    else:
        kernel = functools.partial(_kernel_nobias, scale_eff=scale_eff,
                                   activation=activation)
        out = pl.pallas_call(
            kernel, out_shape=out_shape, grid=grid,
            in_specs=[x_spec, w_spec],
            out_specs=o_spec, scratch_shapes=scratch,
            compiler_params=cparams, cost_estimate=cost,
        )(x, w_kn)

    if (M, N) != (B, out_dim):
        out = out[:B, :out_dim]
    return out


def equal_linear_prepared(x, w_kn, bias=None, *, out_dim, scale, lr_mul=1.0,
                          activation=None, out_dtype=None,
                          tm=512, tn=512, tk=512):
    """Production path: `w_kn` is the output of prepare_weight() (cached)."""
    if activation is not None:
        assert bias is not None, "fused_lrelu path requires a bias (as in the PyTorch module)"
    out_dtype = x.dtype if out_dtype is None else out_dtype
    return _equal_linear_impl(
        x, w_kn, bias,
        out_dim=int(out_dim), scale=float(scale), lr_mul=float(lr_mul),
        activation=activation,
        compute_dtype=jnp.dtype(w_kn.dtype), out_dtype=jnp.dtype(out_dtype),
        tm=int(tm), tn=int(tn), tk=int(tk), num_cores=_num_tensorcores())


def equal_linear(x, weight, bias=None, *, scale, lr_mul=1.0, activation=None,
                 compute_dtype=jnp.bfloat16, out_dtype=None,
                 tm=512, tn=512, tk=512):
    """Convenience entry taking the PyTorch-layout (out_dim, in_dim) weight.

    Prefer prepare_weight() + equal_linear_prepared() in a real model so the
    transpose/pad/cast happens once, not per forward call."""
    out_dim = weight.shape[0]
    w_kn = prepare_weight(weight, compute_dtype)
    return equal_linear_prepared(
        x, w_kn, bias, out_dim=out_dim, scale=scale, lr_mul=lr_mul,
        activation=activation, out_dtype=out_dtype, tm=tm, tn=tn, tk=tk)


def make_equal_linear_params(key, in_dim, out_dim, *, bias=True, bias_init=0.0,
                             lr_mul=1.0):
    """Deterministic synthetic init mirroring EqualLinear.__init__."""
    weight = jax.random.normal(key, (out_dim, in_dim), dtype=jnp.float32) / lr_mul
    b = jnp.full((out_dim,), bias_init, dtype=jnp.float32) if bias else None
    return weight, b


def _reference(x, weight, bias, *, scale, lr_mul, activation,
               compute_dtype=jnp.float32):
    xc = x.astype(compute_dtype)
    wc = weight.astype(compute_dtype)
    out = jnp.dot(xc, wc.T, preferred_element_type=jnp.float32) * scale
    if bias is not None:
        out = out + bias.astype(jnp.float32) * lr_mul
    if activation == "fused_lrelu":
        out = jnp.where(out >= 0.0, out, 0.2 * out) * _SQRT2
    return out.astype(x.dtype)


# --------------------------------------------------------------------------
# self-test
# --------------------------------------------------------------------------
if __name__ == "__main__":
    key = jax.random.PRNGKey(0)
    k_x, k_p, k_x2, k_p2 = jax.random.split(key, 4)

    # --- Case 1: tiny StyleGAN-ish shapes, f32 compute path ----------------
    B, in_dim, out_dim = 8, 32, 16
    lr_mul = 0.5
    scale = 1.0 / math.sqrt(in_dim) * lr_mul

    x = jax.random.normal(k_x, (B, in_dim), dtype=jnp.float32)
    weight, bias = make_equal_linear_params(
        k_p, in_dim, out_dim, bias=True, bias_init=0.1, lr_mul=lr_mul)

    out_lin = jax.block_until_ready(
        equal_linear(x, weight, bias, scale=scale, lr_mul=lr_mul,
                     activation=None, compute_dtype=jnp.float32))
    ref_lin = _reference(x, weight, bias, scale=scale, lr_mul=lr_mul,
                         activation=None)
    assert jnp.allclose(out_lin, ref_lin, atol=5e-4, rtol=5e-4)

    out_act = jax.block_until_ready(
        equal_linear(x, weight, bias, scale=scale, lr_mul=lr_mul,
                     activation="fused_lrelu", compute_dtype=jnp.float32))
    ref_act = _reference(x, weight, bias, scale=scale, lr_mul=lr_mul,
                         activation="fused_lrelu")
    assert jnp.allclose(out_act, ref_act, atol=5e-4, rtol=5e-4)

    out_nb = jax.block_until_ready(
        equal_linear(x, weight, None, scale=scale, lr_mul=lr_mul,
                     activation=None, compute_dtype=jnp.float32))
    ref_nb = _reference(x, weight, None, scale=scale, lr_mul=lr_mul,
                        activation=None)
    assert jnp.allclose(out_nb, ref_nb, atol=5e-4, rtol=5e-4)

    # --- Case 2: bf16 compute, prepared weight, multi-tile grid ------------
    B2, in_dim2, out_dim2 = 16, 256, 384
    lr_mul2 = 1.0
    scale2 = 1.0 / math.sqrt(in_dim2) * lr_mul2
    x2 = jax.random.normal(k_x2, (B2, in_dim2), dtype=jnp.float32)
    w2, b2 = make_equal_linear_params(
        k_p2, in_dim2, out_dim2, bias=True, bias_init=0.05, lr_mul=lr_mul2)

    w2_kn = prepare_weight(w2, jnp.bfloat16)          # one-time prep
    out2 = jax.block_until_ready(
        equal_linear_prepared(x2, w2_kn, b2, out_dim=out_dim2, scale=scale2,
                              lr_mul=lr_mul2, activation="fused_lrelu",
                              tm=8, tn=128, tk=128))  # forces K-accum + N tiles
    # bf16-consistent reference (same cast, f32 accumulate) -> tight check.
    ref2_bf16 = _reference(x2, w2, b2, scale=scale2, lr_mul=lr_mul2,
                           activation="fused_lrelu",
                           compute_dtype=jnp.bfloat16)
    assert jnp.allclose(out2, ref2_bf16, atol=2e-3, rtol=2e-3)
    # full-precision reference -> loose semantic sanity check.
    ref2_f32 = _reference(x2, w2, b2, scale=scale2, lr_mul=lr_mul2,
                          activation="fused_lrelu")
    assert jnp.allclose(out2, ref2_f32, atol=8e-2, rtol=8e-2)

    print("KERNEL_OK")
</pallas_src>

<mosaic_0001>
module attributes {stable_mosaic.version = 11 : i64} {
  func.func @_kernel_bias(%arg0: i32, %arg1: i32, %arg2: i32, %arg3: memref<8x128xf32, #tpu.memory_space<vmem>>, %arg4: memref<128x128xf32, #tpu.memory_space<vmem>>, %arg5: memref<1x128xf32, #tpu.memory_space<vmem>>, %arg6: memref<8x128xf32, #tpu.memory_space<vmem>>, %arg7: memref<8x128xf32, #tpu.memory_space<vmem>>) attributes {dimension_semantics = [#tpu.dimension_semantics<parallel>, #tpu.dimension_semantics<parallel>, #tpu.dimension_semantics<arbitrary>], iteration_bounds = array<i64: 1, 1, 1>, scalar_prefetch = 0 : i64, scratch_operands = 1 : i64, tpu.core_type = #tpu.core_type<tc>, window_params = [{transform_indices = @transform_0, window_bounds = array<i64: 8, 128>}, {transform_indices = @transform_1, window_bounds = array<i64: 128, 128>}, {transform_indices = @transform_2, window_bounds = array<i64: 1, 128>}, {transform_indices = @transform_3, window_bounds = array<i64: 8, 128>}]} {
    %c0 = arith.constant 0 : index
    %c0_0 = arith.constant 0 : index
    %0 = vector.load %arg3[%c0, %c0_0] : memref<8x128xf32, #tpu.memory_space<vmem>>, vector<8x128xf32>
    %c0_1 = arith.constant 0 : index
    %c0_2 = arith.constant 0 : index
    %1 = vector.load %arg4[%c0_1, %c0_2] : memref<128x128xf32, #tpu.memory_space<vmem>>, vector<128x128xf32>
    %cst = arith.constant dense<0.000000e+00> : vector<8x128xf32>
    %2 = tpu.matmul %0, %1, %cst {dimension_numbers = #tpu.dot_dimension_numbers<[1], [0], [0], [1], [0, 0, 1, 1], [], []>} : vector<8x128xf32>, vector<128x128xf32>, vector<8x128xf32> -> vector<8x128xf32>
    %c0_i32 = arith.constant 0 : i32
    %3 = arith.cmpi eq, %arg2, %c0_i32 : i32
    %4 = arith.extui %3 : i1 to i32
    %c0_i32_3 = arith.constant 0 : i32
    %5 = arith.cmpi ne, %4, %c0_i32_3 : i32
    scf.if %5 {
      %c0_8 = arith.constant 0 : index
      %c0_9 = arith.constant 0 : index
      %12 = vector.load %arg7[%c0_8, %c0_9] : memref<8x128xf32, #tpu.memory_space<vmem>>, vector<8x128xf32>
      tpu.vector_store %arg7[%c0_8, %c0_9], %2 {strides = array<i32>} : memref<8x128xf32, #tpu.memory_space<vmem>>, vector<8x128xf32>,
    } else {
    }
    %c0_i32_4 = arith.constant 0 : i32
    %6 = arith.cmpi sgt, %arg2, %c0_i32_4 : i32
    %7 = arith.extui %6 : i1 to i32
    %c0_i32_5 = arith.constant 0 : i32
    %8 = arith.cmpi ne, %7, %c0_i32_5 : i32
    scf.if %8 {
      %c0_8 = arith.constant 0 : index
      %c0_9 = arith.constant 0 : index
      %12 = vector.load %arg7[%c0_8, %c0_9] : memref<8x128xf32, #tpu.memory_space<vmem>>, vector<8x128xf32>
      %13 = arith.addf %12, %2 : vector<8x128xf32>
      %c0_10 = arith.constant 0 : index
      %c0_11 = arith.constant 0 : index
      %14 = vector.load %arg7[%c0_10, %c0_11] : memref<8x128xf32, #tpu.memory_space<vmem>>, vector<8x128xf32>
      tpu.vector_store %arg7[%c0_10, %c0_11], %13 {strides = array<i32>} : memref<8x128xf32, #tpu.memory_space<vmem>>, vector<8x128xf32>,
    } else {
    }
    %c0_i32_6 = arith.constant 0 : i32
    %9 = arith.cmpi eq, %arg2, %c0_i32_6 : i32
    %10 = arith.extui %9 : i1 to i32
    %c0_i32_7 = arith.constant 0 : i32
    %11 = arith.cmpi ne, %10, %c0_i32_7 : i32
    scf.if %11 {
      %c0_8 = arith.constant 0 : index
      %c0_9 = arith.constant 0 : index
      %12 = vector.load %arg7[%c0_8, %c0_9] : memref<8x128xf32, #tpu.memory_space<vmem>>, vector<8x128xf32>
      %cst_10 = arith.constant 0.0883883461 : f32
      %13 = vector.broadcast %cst_10 : f32 to vector<8x128xf32>
      %14 = arith.mulf %12, %13 : vector<8x128xf32>
      %c0_11 = arith.constant 0 : index
      %c0_12 = arith.constant 0 : index
      %15 = vector.load %arg5[%c0_11, %c0_12] : memref<1x128xf32, #tpu.memory_space<vmem>>, vector<1x128xf32>
      %16 = vector.broadcast %15 : vector<1x128xf32> to vector<8x128xf32>
      %17 = arith.addf %14, %16 : vector<8x128xf32>
      %c0_13 = arith.constant 0 : index
      %c0_14 = arith.constant 0 : index
      %18 = vector.load %arg6[%c0_13, %c0_14] : memref<8x128xf32, #tpu.memory_space<vmem>>, vector<8x128xf32>
      tpu.vector_store %arg6[%c0_13, %c0_14], %17 {strides = array<i32>} : memref<8x128xf32, #tpu.memory_space<vmem>>, vector<8x128xf32>,
    } else {
    }
    return
  }
  func.func @transform_0(%arg0: i32, %arg1: i32, %arg2: i32) -> (i32, i32) {
    %c0_i32 = arith.constant 0 : i32
    return %arg0, %arg2 : i32, i32
  }
  func.func @transform_1(%arg0: i32, %arg1: i32, %arg2: i32) -> (i32, i32) {
    %c0_i32 = arith.constant 0 : i32
    return %arg2, %arg1 : i32, i32
  }
  func.func @transform_2(%arg0: i32, %arg1: i32, %arg2: i32) -> (i32, i32) {
    %c0_i32 = arith.constant 0 : i32
    %c0_i32_0 = arith.constant 0 : i32
    return %c0_i32, %arg1 : i32, i32
  }
  func.func @transform_3(%arg0: i32, %arg1: i32, %arg2: i32) -> (i32, i32) {
    %c0_i32 = arith.constant 0 : i32
    return %arg0, %arg1 : i32, i32
  }
}

</mosaic_0001>

<bundles_post_ra>
// kernel: _equal_linear_impl.1
= control target key start
LH: loop header
LB: loop body
LE: loop exit
PB: predicated region body
PF: predicated region fallthrough
CT: control target
= control target key end

     0   :  { %8 = vsyncpa [#allocation4], 0  ;;  %s298_s0 = inlined_call_operand.vmem [shape: f32[8,128], index: 0, kind: input, shape index: {}]   ;;  %s299_s1 = inlined_call_operand.hbm [shape: f32[128,128], index: 1, kind: input, shape index: {}]   ;;  %s300_s2 = inlined_call_operand.vmem [shape: f32[1,128], index: 2, kind: input, shape index: {}]   ;;  %s301_s3 = inlined_call_operand.hbm [shape: f32[8,128], index: 3, kind: output, shape index: {}]  }
   0x1   :  { %9 = vsyncpa [#allocation5], 0  ;;  %s260_s12 = smov [#allocation3]  }
   0x2   :  { %s17_s13 = sshll.u32 %s260_s12, 4  ;;  %s18_s13 = int_to_ptr.vmem [resolvable:$true] %s17_s13 }
   0x3   :  { %s224_s14 = scalar_lea.vmem %s18_s13, 2048  ;;  %p229_p1 = scmp.lt.s32.totalorder %s18_s13, %s18_s13 }
   0x4   :  { %p225_p0 = scmp.ne.s32.totalorder %s18_s13, %s224_s14  ;;  %p230_p2 = scmp.lt.s32.totalorder %s224_s14, %s224_s14 }
   0x6   :  { %p231_p3 = por %p230_p2, %p229_p1 }
   0x8   :  { %p232_p4 = pnand %p231_p3, %p225_p0 }
   0xa   :  { %235 = shalt.err (!%p232_p4)
}
   0xb   :  { %s261_s15 = smov 128   ;;  %s262_s16 = smov 8  }
   0xc   :  { %23 = dma.hbm_to_vmem [thread:$0]  %s299_s1, 2048, %s18_s13, [#allocation4], %s261_s15, %s261_s15, %s262_s16  }
   0xd   :  { %256 = dma.done.wait [#allocation4], 2048  }
   0xe   :  { %257 = vsyncadd [#allocation4], 4294965248  ;;  %v263_v0 = vmov 0.0   ;;  %vm264_vm0 = vmmov 0   ;;  %v45_v1 = vld [vmem:[#allocation3 + $0x78] sm:$0xff]  ;;  %v44_v2 = vld [vmem:[#allocation3 + $0x70] sm:$0xff] }
   0xf   :  { %175 = vmatprep.subr.mxu0 %v263_v0  ;;  %207 = vmatprep.mubr.msk.f32.mxu0 %vm264_vm0, %v263_v0  ;;  %v43_v3 = vld [vmem:[#allocation3 + $0x68] sm:$0xff]  ;;  %v42_v4 = vld [vmem:[#allocation3 + $0x60] sm:$0xff]  ;;  %v41_v5 = vld [vmem:[#allocation3 + $0x58] sm:$0xff]  ;;  %s265_s22 = smov [#allocation6]  }
  0x10   :  { %176 = vmatpush3.msra.mxu0 %v45_v1  ;;  %v40_v6 = vld [vmem:[#allocation3 + $0x50] sm:$0xff]  ;;  %v39_v7 = vld [vmem:[#allocation3 + $0x48] sm:$0xff]  ;;  %v38_v8 = vld [vmem:[#allocation3 + $0x40] sm:$0xff]  ;;  %s148_s23 = sshll.u32 %s265_s22, 4  ;;  %s149_s23 = int_to_ptr.vmem [resolvable:$true] %s148_s23 }
  0x11   :  { %177 = vmatprep.subr.mxu0 %v263_v0  ;;  %v37_v9 = vld [vmem:[#allocation3 + $0x38] sm:$0xff]  ;;  %v36_v10 = vld [vmem:[#allocation3 + $0x30] sm:$0xff]  ;;  %v35_v11 = vld [vmem:[#allocation3 + $0x28] sm:$0xff]  ;;  %s236_s24 = scalar_lea.vmem %s149_s23, 128  ;;  %p241_p6 = scmp.lt.s32.totalorder %s149_s23, %s149_s23 }
  0x12   :  { %178 = vmatpush3.msra.mxu0 %v44_v2  ;;  %v34_v12 = vld [vmem:[#allocation3 + $0x20] sm:$0xff]  ;;  %v33_v13 = vld [vmem:[#allocation3 + $0x18] sm:$0xff]  ;;  %v32_v14 = vld [vmem:[#allocation3 + $0x10] sm:$0xff]  ;;  %p237_p5 = scmp.ne.s32.totalorder %s149_s23, %s236_s24  ;;  %p242_p7 = scmp.lt.s32.totalorder %s236_s24, %s236_s24 }
  0x13   :  { %179 = vmatprep.subr.mxu0 %v263_v0  ;;  %v31_v15 = vld [vmem:[#allocation3 + $0x8] sm:$0xff]  ;;  %v30_v16 = vld [vmem:[#allocation3] sm:$0xff] }
  0x14   :  { %180 = vmatpush3.msra.mxu0 %v43_v3  ;;  %v29_v17 = vld [vmem:[%s298_s0] sm:$0xff]  ;;  %p243_p8 = por %p242_p7, %p241_p6 }
  0x15   :  { %181 = vmatprep.subr.mxu0 %v263_v0  ;;  %v157_v19 = vld [vmem:[%s300_s2] ss:$0 sm:$0xff] }
  0x16   :  { %182 = vmatpush3.msra.mxu0 %v42_v4  ;;  %p244_p9 = pnand %p243_p8, %p237_p5 }
  0x17   :  { %183 = vmatprep.subr.mxu0 %v263_v0 }
  0x18   :  { %184 = vmatpush3.msra.mxu0 %v41_v5 }
  0x19   :  { %185 = vmatprep.subr.mxu0 %v263_v0 }
  0x1a   :  { %186 = vmatpush3.msra.mxu0 %v40_v6 }
  0x1b   :  { %187 = vmatprep.subr.mxu0 %v263_v0 }
  0x1c   :  { %188 = vmatpush3.msra.mxu0 %v39_v7 }
  0x1d   :  { %189 = vmatprep.subr.mxu0 %v263_v0 }
  0x1e   :  { %190 = vmatpush3.msra.mxu0 %v38_v8 }
  0x1f   :  { %191 = vmatprep.subr.mxu0 %v263_v0 }
  0x20   :  { %192 = vmatpush3.msra.mxu0 %v37_v9 }
  0x21   :  { %193 = vmatprep.subr.mxu0 %v263_v0 }
  0x22   :  { %194 = vmatpush3.msra.mxu0 %v36_v10 }
  0x23   :  { %195 = vmatprep.subr.mxu0 %v263_v0 }
  0x24   :  { %196 = vmatpush3.msra.mxu0 %v35_v11 }
  0x25   :  { %197 = vmatprep.subr.mxu0 %v263_v0 }
  0x26   :  { %198 = vmatpush3.msra.mxu0 %v34_v12 }
  0x27   :  { %199 = vmatprep.subr.mxu0 %v263_v0 }
  0x28   :  { %200 = vmatpush3.msra.mxu0 %v33_v13 }
  0x29   :  { %201 = vmatprep.subr.mxu0 %v263_v0 }
  0x2a   :  { %202 = vmatpush3.msra.mxu0 %v32_v14 }
  0x2b   :  { %203 = vmatprep.subr.mxu0 %v263_v0 }
  0x2c   :  { %204 = vmatpush3.msra.mxu0 %v31_v15 }
  0x2d   :  { %205 = vmatprep.subr.mxu0 %v263_v0 }
  0x2e   :  { %206 = vmatpush3.msra.mxu0 %v30_v16 }
  0x2f   :  { %208 = vmatmul.mubr.f32.vlgmr.msra.gmra.mxu0 %v29_v17 }
  0xef   :  { %v112_v18 = vpop.f32.mrf.mxu0 }
  0xf0   :  { %v132_v20 = vmul.f32 0.088388346, %v112_v18 }
  0xf1   :  { %v209_v21 = vpop.f32.mrf.mxu0 }
  0xf2   :  { %v140_v22 = vadd.f32 %v157_v19, %v132_v20 }
  0xf4   :  { %141 = vst [vmem:[#allocation6] sm:$0xff] %v140_v22 }
  0xf5   :  { %247 = shalt.err (!%p244_p9)
}
  0xf6   :  { %151 = dma.vmem_to_hbm [thread:$0]  %s149_s23, 128, %s301_s3, [#allocation5]  }
  0xf7   :  { %258 = dma.done.wait [#allocation5], 128  }
  0xf8   :  { %259 = vsyncadd [#allocation5], 4294967168 }
  0xf9   :  { %155 = vsyncpa [#allocation4], 1 }
  0xfa   :  { %156 = vsyncpa [#allocation5], 1 }

</bundles_post_ra>
